<compile_context>
chip_gen: v7x
topology: tpu7x:2x2x1
jax: 0.10.0
libtpu: 0.0.40
codegen_flags: <defaults>
</compile_context>

<pallas_src>
import jax
import jax.numpy as jnp
import numpy as np
from jax.experimental import pallas as pl
from jax.experimental.pallas import tpu as pltpu


def _fourier_roundtrip_kernel(x_ref, fwd_ref, inv_ref, o_ref):
    """x_ref/o_ref: (TB, HW) f32; fwd_ref/inv_ref: (HW, 2*HW) f32 ([cos | sin])."""
    hw = fwd_ref.shape[0]
    f32 = jnp.float32

    x = x_ref[...]        # (TB, HW)  lane-dense pixels
    fwd = fwd_ref[...]    # [C | S] of the symmetric 2-D DFT matrix
    inv = inv_ref[...]    # [C | S] / (H*W)

    # ---- forward 2-D DFT:  Y = x @ (C - iS)  ->  yr = x@C,  Y_i = -(x@S) ----------
    t = jnp.dot(x, fwd, preferred_element_type=f32)      # (TB, 2*HW): [x@C | x@S]
    yr = t[:, :hw]
    nyi = t[:, hw:]                                      # = -Y_i

    # ---- inverse 2-D DFT (1/(H*W) pre-folded):  Z = Y @ (C + iS) / (H*W) ----------
    a = jnp.dot(yr, inv, preferred_element_type=f32)     # [yr@Cs  | yr@Ss ]
    b = jnp.dot(nyi, inv, preferred_element_type=f32)    # [nyi@Cs | nyi@Ss]
    zr = a[:, :hw] + b[:, hw:]                           # Y_r@Cs - Y_i@Ss
    zi = a[:, hw:] - b[:, :hw]                           # Y_r@Ss + Y_i@Cs

    # abs(ifft2(fft2(x))) -> complex magnitude, float32 (== torch.float)
    o_ref[...] = jnp.sqrt(zr * zr + zi * zi).astype(o_ref.dtype)


def _dft2_matrices(H, W):
    """Full 2-D DFT matrix (Kronecker of the 1-D DFTs) split into cos/sin parts.

    theta[(u*W+v), (h*W+w)] = 2*pi*(u*h/H + v*w/W); the matrix is symmetric, so the
    contraction can always run over the last axis (no transposes anywhere).
    """
    th = 2.0 * np.pi * np.outer(np.arange(H), np.arange(H)) / H   # (H, H)
    tw = 2.0 * np.pi * np.outer(np.arange(W), np.arange(W)) / W   # (W, W)
    theta = (th[:, None, :, None] + tw[None, :, None, :]).reshape(H * W, H * W)
    return np.cos(theta).astype(np.float32), np.sin(theta).astype(np.float32)


def fourier_transform_coe(x, *, tb_max=512):
    """x: (N, C, H, W) float32 (NCHW).  Returns abs(ifft2(fft2(x))) as float32."""
    N, C, H, W = x.shape
    NC, HW = N * C, H * W
    x_flat = x.reshape(NC, HW).astype(jnp.float32)   # lane-dense pixel axis

    c, s = _dft2_matrices(H, W)
    fwd = jnp.asarray(np.concatenate([c, s], axis=1))                # (HW, 2*HW)
    inv = jnp.asarray(np.concatenate([c, s], axis=1) / float(HW))    # scale folded in

    # Batch tile: full batch when small, else a multiple-of-8 tile; the grid supplies
    # double-buffered DMA pipelining and (on v7x) cross-TensorCore parallelism.
    TB = NC if NC <= tb_max else tb_max
    grid = (pl.cdiv(NC, TB),)

    out = pl.pallas_call(
        _fourier_roundtrip_kernel,
        out_shape=jax.ShapeDtypeStruct((NC, HW), jnp.float32),
        grid=grid,
        in_specs=[
            pl.BlockSpec((TB, HW), lambda b: (b, 0)),        # batch-tiled input
            pl.BlockSpec((HW, 2 * HW), lambda b: (0, 0)),    # forward DFT matrix (resident)
            pl.BlockSpec((HW, 2 * HW), lambda b: (0, 0)),    # inverse DFT matrix (resident)
        ],
        out_specs=pl.BlockSpec((TB, HW), lambda b: (b, 0)),  # lane-dense output
        compiler_params=pltpu.CompilerParams(
            dimension_semantics=("parallel",),
            vmem_limit_bytes=32 * 1024 * 1024,
        ),
    )(x_flat, fwd, inv)

    return out.reshape(N, C, H, W)


if __name__ == "__main__":
    key = jax.random.PRNGKey(0)
    x = jax.random.normal(key, (2, 4, 16, 16), dtype=jnp.float32)

    y = fourier_transform_coe(x)
    y = jax.block_until_ready(y)

    # reference: pure-JAX fft2/ifft2 round-trip + abs
    ref = jnp.abs(jnp.fft.ifft2(jnp.fft.fft2(x))).astype(jnp.float32)
    assert y.shape == ref.shape and y.dtype == ref.dtype
    np.testing.assert_allclose(np.asarray(y), np.asarray(ref), atol=1e-3, rtol=1e-3)

    print("KERNEL_OK")
</pallas_src>

<mosaic_0001>
module attributes {stable_mosaic.version = 11 : i64} {
  func.func @_fourier_roundtrip_kernel(%arg0: i32, %arg1: memref<8x256xf32, #tpu.memory_space<vmem>>, %arg2: memref<256x512xf32, #tpu.memory_space<vmem>>, %arg3: memref<256x512xf32, #tpu.memory_space<vmem>>, %arg4: memref<8x256xf32, #tpu.memory_space<vmem>>) attributes {dimension_semantics = [#tpu.dimension_semantics<parallel>], iteration_bounds = array<i64: 1>, scalar_prefetch = 0 : i64, scratch_operands = 0 : i64, tpu.core_type = #tpu.core_type<tc>, window_params = [{transform_indices = @transform_0, window_bounds = array<i64: 8, 256>}, {pipeline_mode = #tpu.pipeline_mode<synchronous>, transform_indices = @transform_1, window_bounds = array<i64: 256, 512>}, {pipeline_mode = #tpu.pipeline_mode<synchronous>, transform_indices = @transform_2, window_bounds = array<i64: 256, 512>}, {transform_indices = @transform_3, window_bounds = array<i64: 8, 256>}]} {
    %c0 = arith.constant 0 : index
    %c0_0 = arith.constant 0 : index
    %0 = vector.load %arg1[%c0, %c0_0] : memref<8x256xf32, #tpu.memory_space<vmem>>, vector<8x256xf32>
    %c0_1 = arith.constant 0 : index
    %c0_2 = arith.constant 0 : index
    %1 = vector.load %arg2[%c0_1, %c0_2] : memref<256x512xf32, #tpu.memory_space<vmem>>, vector<256x512xf32>
    %c0_3 = arith.constant 0 : index
    %c0_4 = arith.constant 0 : index
    %2 = vector.load %arg3[%c0_3, %c0_4] : memref<256x512xf32, #tpu.memory_space<vmem>>, vector<256x512xf32>
    %cst = arith.constant dense<0.000000e+00> : vector<8x512xf32>
    %3 = tpu.matmul %0, %1, %cst {dimension_numbers = #tpu.dot_dimension_numbers<[1], [0], [0], [1], [0, 0, 1, 1], [], []>} : vector<8x256xf32>, vector<256x512xf32>, vector<8x512xf32> -> vector<8x512xf32>
    %4 = vector.extract_strided_slice %3 {offsets = [0, 0], sizes = [8, 256], strides = [1, 1]} : vector<8x512xf32> to vector<8x256xf32>
    %5 = vector.extract_strided_slice %3 {offsets = [0, 256], sizes = [8, 256], strides = [1, 1]} : vector<8x512xf32> to vector<8x256xf32>
    %cst_5 = arith.constant dense<0.000000e+00> : vector<8x512xf32>
    %6 = tpu.matmul %4, %2, %cst_5 {dimension_numbers = #tpu.dot_dimension_numbers<[1], [0], [0], [1], [0, 0, 1, 1], [], []>} : vector<8x256xf32>, vector<256x512xf32>, vector<8x512xf32> -> vector<8x512xf32>
    %cst_6 = arith.constant dense<0.000000e+00> : vector<8x512xf32>
    %7 = tpu.matmul %5, %2, %cst_6 {dimension_numbers = #tpu.dot_dimension_numbers<[1], [0], [0], [1], [0, 0, 1, 1], [], []>} : vector<8x256xf32>, vector<256x512xf32>, vector<8x512xf32> -> vector<8x512xf32>
    %8 = vector.extract_strided_slice %6 {offsets = [0, 0], sizes = [8, 256], strides = [1, 1]} : vector<8x512xf32> to vector<8x256xf32>
    %9 = vector.extract_strided_slice %7 {offsets = [0, 256], sizes = [8, 256], strides = [1, 1]} : vector<8x512xf32> to vector<8x256xf32>
    %10 = arith.addf %8, %9 : vector<8x256xf32>
    %11 = vector.extract_strided_slice %6 {offsets = [0, 256], sizes = [8, 256], strides = [1, 1]} : vector<8x512xf32> to vector<8x256xf32>
    %12 = vector.extract_strided_slice %7 {offsets = [0, 0], sizes = [8, 256], strides = [1, 1]} : vector<8x512xf32> to vector<8x256xf32>
    %13 = arith.subf %11, %12 : vector<8x256xf32>
    %14 = arith.mulf %10, %10 : vector<8x256xf32>
    %15 = arith.mulf %13, %13 : vector<8x256xf32>
    %16 = arith.addf %14, %15 : vector<8x256xf32>
    %17 = math.sqrt %16 : vector<8x256xf32>
    %c0_7 = arith.constant 0 : index
    %c0_8 = arith.constant 0 : index
    %18 = vector.load %arg4[%c0_7, %c0_8] : memref<8x256xf32, #tpu.memory_space<vmem>>, vector<8x256xf32>
    tpu.vector_store %arg4[%c0_7, %c0_8], %17 {strides = array<i32>} : memref<8x256xf32, #tpu.memory_space<vmem>>, vector<8x256xf32>,
    return
  }
  func.func @transform_0(%arg0: i32) -> (i32, i32) {
    %c0_i32 = arith.constant 0 : i32
    %c0_i32_0 = arith.constant 0 : i32
    return %arg0, %c0_i32 : i32, i32
  }
  func.func @transform_1(%arg0: i32) -> (i32, i32) {
    %c0_i32 = arith.constant 0 : i32
    %c0_i32_0 = arith.constant 0 : i32
    %c0_i32_1 = arith.constant 0 : i32
    return %c0_i32, %c0_i32_0 : i32, i32
  }
  func.func @transform_2(%arg0: i32) -> (i32, i32) {
    %c0_i32 = arith.constant 0 : i32
    %c0_i32_0 = arith.constant 0 : i32
    %c0_i32_1 = arith.constant 0 : i32
    return %c0_i32, %c0_i32_0 : i32, i32
  }
  func.func @transform_3(%arg0: i32) -> (i32, i32) {
    %c0_i32 = arith.constant 0 : i32
    %c0_i32_0 = arith.constant 0 : i32
    return %arg0, %c0_i32 : i32, i32
  }
}

</mosaic_0001>

<bundles_post_ra>
// kernel: tpu_custom_call.1
= control target key start
LH: loop header
LB: loop body
LE: loop exit
PB: predicated region body
PF: predicated region fallthrough
CT: control target
= control target key end

     0   :  { %8 = vsyncpa [#allocation3], 0  ;;  %s1614_s0 = inlined_call_operand.hbm [shape: f32[8,256], index: 0, kind: input, shape index: {}]   ;;  %s1615_s1 = inlined_call_operand.hbm [shape: f32[256,512], index: 1, kind: input, shape index: {}]   ;;  %s1616_s2 = inlined_call_operand.hbm [shape: f32[256,512], index: 2, kind: input, shape index: {}]   ;;  %s1617_s3 = inlined_call_operand.hbm [shape: f32[8,256], index: 3, kind: output, shape index: {}]  }
   0x1   :  { %9 = vsyncpa [#allocation6], 0 }
   0x2   :  { %10 = vsyncpa [#allocation4], 0  ;;  %s1270_s12 = smov [#allocation5]   ;;  %s1176_s16 = scalar_lea.hbm %s1615_s1, 16384 }
   0x3   :  { %s26_s13 = sshll.u32 %s1270_s12, 4  ;;  %p1177_p0 = scmp.ne.s32.totalorder %s1615_s1, %s1176_s16  ;;  %s27_s13 = int_to_ptr.vmem [resolvable:$true] %s26_s13 }
   0x4   :  { %p1180_p1 = scmp.lt.u32.totalorder %s1176_s16, %s1615_s1 }
   0x6   :  { %p1182_p2 = pnand %p1180_p1, %p1177_p0 }
   0x8   :  { %1185 = shalt.err (!%p1182_p2)
}
   0x9   :  { %s1186_s21 = scalar_lea.vmem %s27_s13, 16384  ;;  %p1191_p4 = scmp.lt.s32.totalorder %s27_s13, %s27_s13 }
   0xa   :  { %p1187_p3 = scmp.ne.s32.totalorder %s27_s13, %s1186_s21  ;;  %p1192_p5 = scmp.lt.s32.totalorder %s1186_s21, %s1186_s21 }
   0xc   :  { %p1193_p6 = por %p1192_p5, %p1191_p4 }
   0xe   :  { %p1194_p7 = pnand %p1193_p6, %p1187_p3 }
  0x10   :  { %1197 = shalt.err (!%p1194_p7)
}
  0x11   :  { %s1271_s22 = smov 512   ;;  %s1272_s23 = smov 32  }
  0x12   :  { %32 = dma.hbm_to_vmem [thread:$0]  %s1615_s1, 16384, %s27_s13, [#allocation6], %s1271_s22, %s1271_s22, %s1272_s23  }
  0x13   :  { %s1273_s26 = smov [#allocation2]   ;;  %s1274_s28 = smov [#allocation7]  }
  0x14   :  { %s17_s27 = sshll.u32 %s1273_s26, 4  ;;  %s38_s29 = sshll.u32 %s1274_s28, 4  ;;  %s18_s27 = int_to_ptr.vmem [resolvable:$true] %s17_s27  ;;  %s39_s29 = int_to_ptr.vmem [resolvable:$true] %s38_s29 }
  0x15   :  { %s1198_s5 = scalar_lea.hbm %s1614_s0, 256 }
  0x16   :  { %p1199_p8 = scmp.ne.s32.totalorder %s1614_s0, %s1198_s5  ;;  %p1202_p9 = scmp.lt.u32.totalorder %s1198_s5, %s1614_s0 }
  0x18   :  { %p1204_p10 = pnand %p1202_p9, %p1199_p8 }
  0x1a   :  { %1207 = shalt.err (!%p1204_p10)
}
  0x1b   :  { %s1208_s1 = scalar_lea.vmem %s18_s27, 256  ;;  %p1213_p12 = scmp.lt.s32.totalorder %s18_s27, %s18_s27 }
  0x1c   :  { %p1209_p11 = scmp.ne.s32.totalorder %s18_s27, %s1208_s1  ;;  %p1214_p13 = scmp.lt.s32.totalorder %s1208_s1, %s1208_s1 }
  0x1e   :  { %p1215_p0 = por %p1214_p13, %p1213_p12 }
  0x20   :  { %p1216_p1 = pnand %p1215_p0, %p1209_p11 }
  0x22   :  { %1219 = shalt.err (!%p1216_p1)
}
  0x23   :  { %20 = dma.hbm_to_vmem [thread:$0]  %s1614_s0, 256, %s18_s27, [#allocation3]  }
  0x24   :  { %s1220_s14 = scalar_lea.hbm %s1616_s2, 16384 }
  0x25   :  { %p1221_p2 = scmp.ne.s32.totalorder %s1616_s2, %s1220_s14  ;;  %p1224_p3 = scmp.lt.u32.totalorder %s1220_s14, %s1616_s2 }
  0x27   :  { %p1226_p4 = pnand %p1224_p3, %p1221_p2 }
  0x29   :  { %1229 = shalt.err (!%p1226_p4)
}
  0x2a   :  { %s1230_s19 = scalar_lea.vmem %s39_s29, 16384  ;;  %p1235_p6 = scmp.lt.s32.totalorder %s39_s29, %s39_s29 }
  0x2b   :  { %p1231_p5 = scmp.ne.s32.totalorder %s39_s29, %s1230_s19  ;;  %p1236_p7 = scmp.lt.s32.totalorder %s1230_s19, %s1230_s19 }
  0x2d   :  { %p1237_p8 = por %p1236_p7, %p1235_p6 }
  0x2f   :  { %p1238_p9 = pnand %p1237_p8, %p1231_p5 }
  0x31   :  { %1241 = shalt.err (!%p1238_p9)
}
  0x32   :  { %44 = dma.hbm_to_vmem [thread:$0]  %s1616_s2, 16384, %s39_s29, [#allocation6], %s1271_s22, %s1271_s22, %s1272_s23  }
  0x33   :  { %1264 = dma.done.wait [#allocation3], 256  }
  0x34   :  { %1265 = vsyncadd [#allocation3], 4294967040 }
  0x35   :  { %1266 = dma.done.wait [#allocation6], 32768  }
  0x36   :  { %1267 = vsyncadd [#allocation6], 4294934528  ;;  %v57_v0 = vld [vmem:[#allocation5 + $0x8] sm:$0xff]  ;;  %v56_v2 = vld [vmem:[#allocation5] sm:$0xff]  ;;  %s1275_s2 = smov [#allocation8]  }
  0x37   :  { %v61_v1 = vld [vmem:[#allocation5 + $0x28] sm:$0xff]  ;;  %v60_v4 = vld [vmem:[#allocation5 + $0x20] sm:$0xff]  ;;  %v1338_v41 = vld [vmem:[#allocation2 + $0x8] sm:$0xff]  ;;  %s770_s21 = sshll.u32 %s1275_s2, 4  ;;  %s771_s21 = int_to_ptr.vmem [resolvable:$true] %s770_s21 }
  0x38   :  { %v780_v3 = vpack.c.bf16 %v61_v1, %v57_v0  ;;  %v65_v5 = vld [vmem:[#allocation5 + $0x48] sm:$0xff]  ;;  %v782_v7 = vpack.c.bf16 %v60_v4, %v56_v2  ;;  %v64_v9 = vld [vmem:[#allocation5 + $0x40] sm:$0xff]  ;;  %376 = vmatprep.mubr.f32.mxu1 %v1338_v41  ;;  %s1242_s22 = scalar_lea.vmem %s771_s21, 256  ;;  %p1247_p11 = scmp.lt.s32.totalorder %s771_s21, %s771_s21 }
  0x39   :  { %v69_v6 = vld [vmem:[#allocation5 + $0x68] sm:$0xff]  ;;  %v68_v10 = vld [vmem:[#allocation5 + $0x60] sm:$0xff]  ;;  %p1243_p10 = scmp.ne.s32.totalorder %s771_s21, %s1242_s22  ;;  %p1248_p12 = scmp.lt.s32.totalorder %s1242_s22, %s1242_s22 }
  0x3a   :  { %v784_v8 = vpack.c.bf16 %v69_v6, %v65_v5  ;;  %v73_v11 = vld [vmem:[#allocation5 + $0x88] sm:$0xff]  ;;  %781 = vmatprep.subr.bf16.mxu1 %v780_v3  ;;  %v786_v13 = vpack.c.bf16 %v68_v10, %v64_v9  ;;  %v72_v15 = vld [vmem:[#allocation5 + $0x80] sm:$0xff] }
  0x3b   :  { %v77_v12 = vld [vmem:[#allocation5 + $0xa8] sm:$0xff]  ;;  %783 = vmatpush1.bf16.msra.mxu1 %v782_v7  ;;  %v76_v16 = vld [vmem:[#allocation5 + $0xa0] sm:$0xff]  ;;  %p1249_p13 = por %p1248_p12, %p1247_p11 }
  0x3c   :  { %785 = vmatprep.subr.bf16.mxu1 %v784_v8  ;;  %v788_v14 = vpack.c.bf16 %v77_v12, %v73_v11  ;;  %v81_v17 = vld [vmem:[#allocation5 + $0xc8] sm:$0xff]  ;;  %v790_v19 = vpack.c.bf16 %v76_v16, %v72_v15  ;;  %v80_v21 = vld [vmem:[#allocation5 + $0xc0] sm:$0xff] }
  0x3d   :  { %v85_v18 = vld [vmem:[#allocation5 + $0xe8] sm:$0xff]  ;;  %v84_v22 = vld [vmem:[#allocation5 + $0xe0] sm:$0xff]  ;;  %p1250_p0 = pnand %p1249_p13, %p1243_p10 }
  0x3e   :  { %v792_v20 = vpack.c.bf16 %v85_v18, %v81_v17  ;;  %v89_v23 = vld [vmem:[#allocation5 + $0x108] sm:$0xff]  ;;  %v794_v25 = vpack.c.bf16 %v84_v22, %v80_v21  ;;  %v88_v27 = vld [vmem:[#allocation5 + $0x100] sm:$0xff] }
  0x3f   :  { %787 = vmatpush1.bf16.msra.mxu1 %v786_v13  ;;  %v93_v24 = vld [vmem:[#allocation5 + $0x128] sm:$0xff]  ;;  %v92_v28 = vld [vmem:[#allocation5 + $0x120] sm:$0xff] }
  0x40   :  { %789 = vmatprep.subr.bf16.mxu1 %v788_v14  ;;  %v796_v26 = vpack.c.bf16 %v93_v24, %v89_v23  ;;  %v97_v29 = vld [vmem:[#allocation5 + $0x148] sm:$0xff]  ;;  %v798_v31 = vpack.c.bf16 %v92_v28, %v88_v27  ;;  %v96_v33 = vld [vmem:[#allocation5 + $0x140] sm:$0xff] }
  0x41   :  { %v101_v30 = vld [vmem:[#allocation5 + $0x168] sm:$0xff]  ;;  %v100_v34 = vld [vmem:[#allocation5 + $0x160] sm:$0xff] }
  0x42   :  { %v800_v32 = vpack.c.bf16 %v101_v30, %v97_v29  ;;  %v105_v35 = vld [vmem:[#allocation5 + $0x188] sm:$0xff]  ;;  %v802_v37 = vpack.c.bf16 %v100_v34, %v96_v33  ;;  %v104_v39 = vld [vmem:[#allocation5 + $0x180] sm:$0xff] }
  0x43   :  { %791 = vmatpush1.bf16.msra.mxu1 %v790_v19  ;;  %v109_v36 = vld [vmem:[#allocation5 + $0x1a8] sm:$0xff]  ;;  %v108_v40 = vld [vmem:[#allocation5 + $0x1a0] sm:$0xff] }
  0x44   :  { %793 = vmatprep.subr.bf16.mxu1 %v792_v20  ;;  %v804_v38 = vpack.c.bf16 %v109_v36, %v105_v35  ;;  %v113_v42 = vld [vmem:[#allocation5 + $0x1c8] sm:$0xff]  ;;  %v806_v44 = vpack.c.bf16 %v108_v40, %v104_v39  ;;  %v112_v46 = vld [vmem:[#allocation5 + $0x1c0] sm:$0xff] }
  0x45   :  { %v117_v43 = vld [vmem:[#allocation5 + $0x1e8] sm:$0xff]  ;;  %v116_v47 = vld [vmem:[#allocation5 + $0x1e0] sm:$0xff] }
  0x46   :  { %v808_v45 = vpack.c.bf16 %v117_v43, %v113_v42  ;;  %v121_v48 = vld [vmem:[#allocation5 + $0x208] sm:$0xff]  ;;  %v810_v50 = vpack.c.bf16 %v116_v47, %v112_v46  ;;  %v120_v52 = vld [vmem:[#allocation5 + $0x200] sm:$0xff] }
  0x47   :  { %795 = vmatpush1.bf16.msra.mxu1 %v794_v25  ;;  %v125_v49 = vld [vmem:[#allocation5 + $0x228] sm:$0xff]  ;;  %v124_v53 = vld [vmem:[#allocation5 + $0x220] sm:$0xff] }
  0x48   :  { %797 = vmatprep.subr.bf16.mxu1 %v796_v26  ;;  %v812_v51 = vpack.c.bf16 %v125_v49, %v121_v48  ;;  %v129_v54 = vld [vmem:[#allocation5 + $0x248] sm:$0xff]  ;;  %v814_v56 = vpack.c.bf16 %v124_v53, %v120_v52  ;;  %v128_v58 = vld [vmem:[#allocation5 + $0x240] sm:$0xff] }
  0x49   :  { %v133_v55 = vld [vmem:[#allocation5 + $0x268] sm:$0xff]  ;;  %v132_v59 = vld [vmem:[#allocation5 + $0x260] sm:$0xff] }
  0x4a   :  { %v816_v57 = vpack.c.bf16 %v133_v55, %v129_v54  ;;  %v137_v60 = vld [vmem:[#allocation5 + $0x288] sm:$0xff]  ;;  %v818_v62 = vpack.c.bf16 %v132_v59, %v128_v58  ;;  %v136_v0 = vld [vmem:[#allocation5 + $0x280] sm:$0xff] }
  0x4b   :  { %799 = vmatpush1.bf16.msra.mxu1 %v798_v31  ;;  %v141_v61 = vld [vmem:[#allocation5 + $0x2a8] sm:$0xff]  ;;  %v140_v1 = vld [vmem:[#allocation5 + $0x2a0] sm:$0xff] }
  0x4c   :  { %801 = vmatprep.subr.bf16.mxu1 %v800_v32  ;;  %v820_v63 = vpack.c.bf16 %v141_v61, %v137_v60  ;;  %v145_v2 = vld [vmem:[#allocation5 + $0x2c8] sm:$0xff]  ;;  %v822_v4 = vpack.c.bf16 %v140_v1, %v136_v0  ;;  %v144_v6 = vld [vmem:[#allocation5 + $0x2c0] sm:$0xff]  ;;  %v59_v0 = vld [vmem:[#allocation5 + $0x18] sm:$0xff] }
  0x4d   :  { %v149_v3 = vld [vmem:[#allocation5 + $0x2e8] sm:$0xff]  ;;  %v148_v7 = vld [vmem:[#allocation5 + $0x2e0] sm:$0xff]  ;;  %v63_v1 = vld [vmem:[#allocation5 + $0x38] sm:$0xff] }
  0x4e   :  { %v824_v5 = vpack.c.bf16 %v149_v3, %v145_v2  ;;  %v153_v8 = vld [vmem:[#allocation5 + $0x308] sm:$0xff]  ;;  %v826_v12 = vpack.c.bf16 %v148_v7, %v144_v6  ;;  %v152_v13 = vld [vmem:[#allocation5 + $0x300] sm:$0xff]  ;;  %v844_v7 = vpack.c.bf16 %v63_v1, %v59_v0 }
  0x4f   :  { %803 = vmatpush1.bf16.msra.mxu1 %v802_v37  ;;  %v157_v9 = vld [vmem:[#allocation5 + $0x328] sm:$0xff]  ;;  %v184_v15 = vld [vmem:[#allocation7] sm:$0xff] }
  0x50   :  { %805 = vmatprep.subr.bf16.mxu1 %v804_v38  ;;  %v185_v10 = vld [vmem:[#allocation7 + $0x8] sm:$0xff]  ;;  %v188_v16 = vld [vmem:[#allocation7 + $0x20] sm:$0xff]  ;;  %v828_v17 = vpack.c.bf16 %v157_v9, %v153_v8  ;;  %v58_v8 = vld [vmem:[#allocation5 + $0x10] sm:$0xff] }
  0x51   :  { %v189_v11 = vld [vmem:[#allocation7 + $0x28] sm:$0xff]  ;;  %v156_v18 = vld [vmem:[#allocation5 + $0x320] sm:$0xff]  ;;  %v1343_v21 = vpack.c.bf16 %v188_v16, %v184_v15  ;;  %v62_v9 = vld [vmem:[#allocation5 + $0x30] sm:$0xff] }
  0x52   :  { %v1341_v14 = vpack.c.bf16 %v189_v11, %v185_v10  ;;  %v161_v19 = vld [vmem:[#allocation5 + $0x348] sm:$0xff]  ;;  %v192_v24 = vld [vmem:[#allocation7 + $0x40] sm:$0xff]  ;;  %v830_v27 = vpack.c.bf16 %v156_v18, %v152_v13  ;;  %v67_v10 = vld [vmem:[#allocation5 + $0x58] sm:$0xff] }
  0x53   :  { %807 = vmatpush1.bf16.msra.mxu1 %v806_v44  ;;  %v165_v20 = vld [vmem:[#allocation5 + $0x368] sm:$0xff]  ;;  %v196_v26 = vld [vmem:[#allocation7 + $0x60] sm:$0xff]  ;;  %v71_v11 = vld [vmem:[#allocation5 + $0x78] sm:$0xff] }
  0x54   :  { %809 = vmatprep.subr.bf16.mxu1 %v808_v45  ;;  %909 = vmatprep.subr.bf16.mxu0 %v1341_v14  ;;  %v193_v22 = vld [vmem:[#allocation7 + $0x48] sm:$0xff]  ;;  %v160_v28 = vld [vmem:[#allocation5 + $0x340] sm:$0xff]  ;;  %v1349_v30 = vpack.c.bf16 %v196_v26, %v192_v24  ;;  %v832_v32 = vpack.c.bf16 %v165_v20, %v161_v19  ;;  %v1372_v15 = vld [vmem:[#allocation2] sm:$0xff] }
  0x55   :  { %v197_v23 = vld [vmem:[#allocation7 + $0x68] sm:$0xff]  ;;  %911 = vmatpush1.bf16.msra.mxu0 %v1343_v21  ;;  %v164_v29 = vld [vmem:[#allocation5 + $0x360] sm:$0xff]  ;;  %v66_v18 = vld [vmem:[#allocation5 + $0x50] sm:$0xff] }
  0x56   :  { %v1347_v25 = vpack.c.bf16 %v197_v23, %v193_v22  ;;  %v201_v31 = vld [vmem:[#allocation7 + $0x88] sm:$0xff]  ;;  %v200_v34 = vld [vmem:[#allocation7 + $0x80] sm:$0xff]  ;;  %v834_v43 = vpack.c.bf16 %v164_v29, %v160_v28  ;;  %v848_v22 = vpack.c.bf16 %v71_v11, %v67_v10  ;;  %v70_v23 = vld [vmem:[#allocation5 + $0x70] sm:$0xff] }
  0x57   :  { %811 = vmatpush1.bf16.msra.mxu1 %v810_v50  ;;  %v205_v33 = vld [vmem:[#allocation7 + $0xa8] sm:$0xff]  ;;  %v204_v35 = vld [vmem:[#allocation7 + $0xa0] sm:$0xff]  ;;  %v75_v28 = vld [vmem:[#allocation5 + $0x98] sm:$0xff] }
  0x58   :  { %813 = vmatprep.subr.bf16.mxu1 %v812_v51  ;;  %913 = vmatprep.subr.bf16.mxu0 %v1347_v25  ;;  %v169_v36 = vld [vmem:[#allocation5 + $0x388] sm:$0xff]  ;;  %v1352_v38 = vpack.c.bf16 %v205_v33, %v201_v31  ;;  %v1355_v39 = vpack.c.bf16 %v204_v35, %v200_v34  ;;  %v208_v45 = vld [vmem:[#allocation7 + $0xc0] sm:$0xff]  ;;  %v79_v29 = vld [vmem:[#allocation5 + $0xb8] sm:$0xff] }
  0x59   :  { %v173_v37 = vld [vmem:[#allocation5 + $0x3a8] sm:$0xff]  ;;  %915 = vmatpush1.bf16.msra.mxu0 %v1349_v30  ;;  %v212_v46 = vld [vmem:[#allocation7 + $0xe0] sm:$0xff]  ;;  %v74_v33 = vld [vmem:[#allocation5 + $0x90] sm:$0xff] }
  0x5a   :  { %v209_v40 = vld [vmem:[#allocation7 + $0xc8] sm:$0xff]  ;;  %917 = vmatprep.subr.bf16.mxu0 %v1352_v38  ;;  %v836_v47 = vpack.c.bf16 %v173_v37, %v169_v36  ;;  %v168_v48 = vld [vmem:[#allocation5 + $0x380] sm:$0xff]  ;;  %v1361_v54 = vpack.c.bf16 %v212_v46, %v208_v45  ;;  %v852_v37 = vpack.c.bf16 %v79_v29, %v75_v28  ;;  %v83_v45 = vld [vmem:[#allocation5 + $0xd8] sm:$0xff] }
  0x5b   :  { %815 = vmatpush1.bf16.msra.mxu1 %v814_v56  ;;  %v213_v42 = vld [vmem:[#allocation7 + $0xe8] sm:$0xff]  ;;  %v172_v49 = vld [vmem:[#allocation5 + $0x3a0] sm:$0xff]  ;;  %v87_v46 = vld [vmem:[#allocation5 + $0xf8] sm:$0xff] }
  0x5c   :  { %817 = vmatprep.subr.bf16.mxu1 %v816_v57  ;;  %v1358_v44 = vpack.c.bf16 %v213_v42, %v209_v40  ;;  %v177_v50 = vld [vmem:[#allocation5 + $0x3c8] sm:$0xff]  ;;  %v838_v55 = vpack.c.bf16 %v172_v49, %v168_v48  ;;  %v176_v56 = vld [vmem:[#allocation5 + $0x3c0] sm:$0xff]  ;;  %v78_v40 = vld [vmem:[#allocation5 + $0xb0] sm:$0xff] }
  0x5d   :  { %v181_v51 = vld [vmem:[#allocation5 + $0x3e8] sm:$0xff]  ;;  %919 = vmatpush1.bf16.msra.mxu0 %v1355_v39  ;;  %v216_v58 = vld [vmem:[#allocation7 + $0x100] sm:$0xff]  ;;  %v854_v48 = vpack.c.bf16 %v78_v40, %v74_v33  ;;  %v110_v40 = vld [vmem:[#allocation5 + $0x1b0] sm:$0xff] }
  0x5e   :  { %v217_v52 = vld [vmem:[#allocation7 + $0x108] sm:$0xff]  ;;  %921 = vmatprep.subr.bf16.mxu0 %v1358_v44  ;;  %v220_v59 = vld [vmem:[#allocation7 + $0x120] sm:$0xff]  ;;  %v840_v60 = vpack.c.bf16 %v181_v51, %v177_v50 }
  0x5f   :  { %819 = vmatpush1.bf16.msra.mxu1 %v818_v62  ;;  %v221_v53 = vld [vmem:[#allocation7 + $0x128] sm:$0xff]  ;;  %v180_v61 = vld [vmem:[#allocation5 + $0x3e0] sm:$0xff]  ;;  %v1367_v2 = vpack.c.bf16 %v220_v59, %v216_v58  ;;  %v91_v58 = vld [vmem:[#allocation5 + $0x118] sm:$0xff] }
  0x60   :  { %821 = vmatprep.subr.bf16.mxu1 %v820_v63  ;;  %v1364_v57 = vpack.c.bf16 %v221_v53, %v217_v52  ;;  %v225_v62 = vld [vmem:[#allocation7 + $0x148] sm:$0xff]  ;;  %v842_v3 = vpack.c.bf16 %v180_v61, %v176_v56  ;;  %v228_v6 = vld [vmem:[#allocation7 + $0x160] sm:$0xff]  ;;  %v856_v52 = vpack.c.bf16 %v87_v46, %v83_v45  ;;  %v86_v53 = vld [vmem:[#allocation5 + $0xf0] sm:$0xff] }
  0x61   :  { %v229_v63 = vld [vmem:[#allocation7 + $0x168] sm:$0xff]  ;;  %923 = vmatpush1.bf16.msra.mxu0 %v1361_v54  ;;  %v232_v19 = vld [vmem:[#allocation7 + $0x180] sm:$0xff]  ;;  %v95_v59 = vld [vmem:[#allocation5 + $0x138] sm:$0xff] }
  0x62   :  { %925 = vmatprep.subr.bf16.mxu0 %v1364_v57  ;;  %v237_v13 = vld [vmem:[#allocation7 + $0x1a8] sm:$0xff]  ;;  %v236_v20 = vld [vmem:[#allocation7 + $0x1a0] sm:$0xff]  ;;  %v115_v45 = vld [vmem:[#allocation5 + $0x1d8] sm:$0xff] }
  0x63   :  { %823 = vmatpush1.bf16.msra.mxu1 %v822_v4  ;;  %v1370_v4 = vpack.c.bf16 %v229_v63, %v225_v62  ;;  %v241_v26 = vld [vmem:[#allocation7 + $0x1c8] sm:$0xff]  ;;  %v1382_v31 = vpack.c.bf16 %v236_v20, %v232_v19  ;;  %v240_v35 = vld [vmem:[#allocation7 + $0x1c0] sm:$0xff]  ;;  %v90_v62 = vld [vmem:[#allocation5 + $0x110] sm:$0xff] }
  0x64   :  { %825 = vmatprep.subr.bf16.mxu1 %v824_v5  ;;  %v224_v5 = vld [vmem:[#allocation7 + $0x140] sm:$0xff]  ;;  %v249_v42 = vld [vmem:[#allocation7 + $0x208] sm:$0xff]  ;;  %v102_v20 = vld [vmem:[#allocation5 + $0x170] sm:$0xff] }
  0x65   :  { %927 = vmatpush1.bf16.msra.mxu0 %v1367_v2  ;;  %v1375_v16 = vpack.c.bf16 %v228_v6, %v224_v5  ;;  %v244_v36 = vld [vmem:[#allocation7 + $0x1e0] sm:$0xff]  ;;  %v261_v56 = vld [vmem:[#allocation7 + $0x268] sm:$0xff]  ;;  %v94_v5 = vld [vmem:[#allocation5 + $0x130] sm:$0xff] }
  0x66   :  { %929 = vmatprep.subr.bf16.mxu0 %v1370_v4  ;;  %v248_v50 = vld [vmem:[#allocation7 + $0x200] sm:$0xff]  ;;  %v265_v6 = vld [vmem:[#allocation7 + $0x288] sm:$0xff]  ;;  %v862_v11 = vpack.c.bf16 %v94_v5, %v90_v62  ;;  %v119_v46 = vld [vmem:[#allocation5 + $0x1f8] sm:$0xff] }
  0x67   :  { %827 = vmatpush1.bf16.msra.mxu1 %v826_v12  ;;  %v233_v12 = vld [vmem:[#allocation7 + $0x188] sm:$0xff]  ;;  %v252_v51 = vld [vmem:[#allocation7 + $0x220] sm:$0xff]  ;;  %v127_v62 = vld [vmem:[#allocation5 + $0x238] sm:$0xff] }
  0x68   :  { %829 = vmatprep.subr.bf16.mxu1 %v828_v17  ;;  %v846_v17 = vpack.c.bf16 %v62_v9, %v58_v8  ;;  %v1378_v24 = vpack.c.bf16 %v237_v13, %v233_v12  ;;  %v256_v0 = vld [vmem:[#allocation7 + $0x240] sm:$0xff]  ;;  %v99_v8 = vld [vmem:[#allocation5 + $0x158] sm:$0xff]  ;;  %v98_v12 = vld [vmem:[#allocation5 + $0x150] sm:$0xff] }
  0x69   :  { %931 = vmatpush1.bf16.msra.mxu0 %v1375_v16  ;;  %v260_v1 = vld [vmem:[#allocation7 + $0x260] sm:$0xff]  ;;  %v103_v9 = vld [vmem:[#allocation5 + $0x178] sm:$0xff]  ;;  %v866_v29 = vpack.c.bf16 %v102_v20, %v98_v12  ;;  %v301_v12 = vld [vmem:[#allocation7 + $0x3a8] sm:$0xff] }
  0x6a   :  { %933 = vmatprep.subr.bf16.mxu0 %v1378_v24  ;;  %v1401_v10 = vpack.c.bf16 %v260_v1, %v256_v0  ;;  %v864_v19 = vpack.c.bf16 %v103_v9, %v99_v8  ;;  %v126_v9 = vld [vmem:[#allocation5 + $0x230] sm:$0xff] }
  0x6b   :  { %831 = vmatpush1.bf16.msra.mxu1 %v830_v27  ;;  %v245_v27 = vld [vmem:[#allocation7 + $0x1e8] sm:$0xff] }
  0x6c   :  { %833 = vmatprep.subr.bf16.mxu1 %v832_v32  ;;  %v850_v32 = vpack.c.bf16 %v70_v23, %v66_v18  ;;  %v1385_v34 = vpack.c.bf16 %v245_v27, %v241_v26  ;;  %v268_v18 = vld [vmem:[#allocation7 + $0x2a0] sm:$0xff]  ;;  %v277_v23 = vld [vmem:[#allocation7 + $0x2e8] sm:$0xff]  ;;  %v107_v26 = vld [vmem:[#allocation5 + $0x198] sm:$0xff] }
  0x6d   :  { %935 = vmatpush1.bf16.msra.mxu0 %v1382_v31  ;;  %v111_v27 = vld [vmem:[#allocation5 + $0x1b8] sm:$0xff] }
  0x6e   :  { %937 = vmatprep.subr.bf16.mxu0 %v1385_v34 }
  0x6f   :  { %835 = vmatpush1.bf16.msra.mxu1 %v834_v43  ;;  %v253_v43 = vld [vmem:[#allocation7 + $0x228] sm:$0xff] }
  0x70   :  { %837 = vmatprep.subr.bf16.mxu1 %v836_v47  ;;  %v1389_v47 = vpack.c.bf16 %v244_v36, %v240_v35  ;;  %v1392_v49 = vpack.c.bf16 %v253_v43, %v249_v42  ;;  %v272_v35 = vld [vmem:[#allocation7 + $0x2c0] sm:$0xff]  ;;  %v281_v42 = vld [vmem:[#allocation7 + $0x308] sm:$0xff] }
  0x71   :  { %v276_v36 = vld [vmem:[#allocation7 + $0x2e0] sm:$0xff]  ;;  %v285_v43 = vld [vmem:[#allocation7 + $0x328] sm:$0xff] }
  0x72   :  { %939 = vmatpush1.bf16.msra.mxu0 %v1389_v47 }
  0x73   :  { %839 = vmatpush1.bf16.msra.mxu1 %v838_v55  ;;  %v257_v55 = vld [vmem:[#allocation7 + $0x248] sm:$0xff]  ;;  %941 = vmatprep.subr.bf16.mxu0 %v1392_v49 }
  0x74   :  { %841 = vmatprep.subr.bf16.mxu1 %v840_v60  ;;  %v1395_v60 = vpack.c.bf16 %v252_v51, %v248_v50  ;;  %v1398_v63 = vpack.c.bf16 %v261_v56, %v257_v55  ;;  %v114_v50 = vld [vmem:[#allocation5 + $0x1d0] sm:$0xff]  ;;  %v1416_v51 = vpack.c.bf16 %v285_v43, %v281_v42  ;;  %v872_v55 = vpack.c.bf16 %v119_v46, %v115_v45  ;;  %v304_v46 = vld [vmem:[#allocation7 + $0x3c0] sm:$0xff] }
  0x75   :  { %v118_v56 = vld [vmem:[#allocation5 + $0x1f0] sm:$0xff] }
  0x76   :  { %943 = vmatpush1.bf16.msra.mxu0 %v1395_v60  ;;  %v874_v1 = vpack.c.bf16 %v118_v56, %v114_v50  ;;  %v151_v56 = vld [vmem:[#allocation5 + $0x2f8] sm:$0xff] }
  0x77   :  { %843 = vmatpush1.bf16.msra.mxu1 %v842_v3  ;;  %v860_v3 = vpack.c.bf16 %v95_v59, %v91_v58  ;;  %945 = vmatprep.subr.bf16.mxu0 %v1398_v63  ;;  %v289_v58 = vld [vmem:[#allocation7 + $0x348] sm:$0xff] }
  0x78   :  { %845 = vmatprep.subr.bf16.mxu1 %v844_v7  ;;  %v269_v7 = vld [vmem:[#allocation7 + $0x2a8] sm:$0xff] }
  0x79   :  { %v1404_v13 = vpack.c.bf16 %v269_v7, %v265_v6  ;;  %v293_v59 = vld [vmem:[#allocation7 + $0x368] sm:$0xff]  ;;  %v288_v6 = vld [vmem:[#allocation7 + $0x340] sm:$0xff] }
  0x7a   :  { %377 = vmatmul.mubr.f32.vlgmr.msra.gmra.mrb[0].mxu1 %v1372_v15  ;;  %947 = vmatpush1.bf16.msra.mxu0 %v1401_v10  ;;  %v1422_v5 = vpack.c.bf16 %v293_v59, %v289_v58  ;;  %v292_v7 = vld [vmem:[#allocation7 + $0x360] sm:$0xff] }
  0x7b   :  { %847 = vmatpush1.bf16.msra.mxu1 %v846_v17  ;;  %447 = vmatprep.mubr.f32.mxu1 %v1338_v41  ;;  %v82_v41 = vld [vmem:[#allocation5 + $0xd0] sm:$0xff]  ;;  %v264_v17 = vld [vmem:[#allocation7 + $0x280] sm:$0xff] }
  0x7c   :  { %849 = vmatprep.subr.bf16.mxu1 %v848_v22  ;;  %v858_v61 = vpack.c.bf16 %v86_v53, %v82_v41  ;;  %v273_v22 = vld [vmem:[#allocation7 + $0x2c8] sm:$0xff]  ;;  %v1407_v28 = vpack.c.bf16 %v268_v18, %v264_v17  ;;  %949 = vmatprep.subr.bf16.mxu0 %v1404_v13  ;;  %v284_v53 = vld [vmem:[#allocation7 + $0x320] sm:$0xff]  ;;  %v131_v17 = vld [vmem:[#allocation5 + $0x258] sm:$0xff] }
  0x7d   :  { %v1410_v33 = vpack.c.bf16 %v277_v23, %v273_v22  ;;  %v135_v18 = vld [vmem:[#allocation5 + $0x278] sm:$0xff]  ;;  %v130_v22 = vld [vmem:[#allocation5 + $0x250] sm:$0xff] }
  0x7e   :  { %951 = vmatpush1.bf16.msra.mxu0 %v1407_v28 }
  0x7f   :  { %851 = vmatpush1.bf16.msra.mxu1 %v850_v32  ;;  %v106_v32 = vld [vmem:[#allocation5 + $0x190] sm:$0xff]  ;;  %953 = vmatprep.subr.bf16.mxu0 %v1410_v33 }
  0x80   :  { %853 = vmatprep.subr.bf16.mxu1 %v852_v37  ;;  %v868_v37 = vpack.c.bf16 %v111_v27, %v107_v26  ;;  %v870_v41 = vpack.c.bf16 %v110_v40, %v106_v32  ;;  %v296_v26 = vld [vmem:[#allocation7 + $0x380] sm:$0xff]  ;;  %v134_v32 = vld [vmem:[#allocation5 + $0x270] sm:$0xff]  ;;  %v143_v40 = vld [vmem:[#allocation5 + $0x2b8] sm:$0xff] }
  0x81   :  { %v300_v27 = vld [vmem:[#allocation7 + $0x3a0] sm:$0xff]  ;;  %v882_v43 = vpack.c.bf16 %v134_v32, %v130_v22  ;;  %v162_v22 = vld [vmem:[#allocation5 + $0x350] sm:$0xff] }
  0x82   :  { %v1431_v42 = vpack.c.bf16 %v300_v27, %v296_v26  ;;  %v166_v26 = vld [vmem:[#allocation5 + $0x370] sm:$0xff]  ;;  %v171_v27 = vld [vmem:[#allocation5 + $0x398] sm:$0xff] }
  0x83   :  { %855 = vmatpush1.bf16.msra.mxu1 %v854_v48  ;;  %v1413_v48 = vpack.c.bf16 %v276_v36, %v272_v35  ;;  %v305_v35 = vld [vmem:[#allocation7 + $0x3c8] sm:$0xff]  ;;  %v898_v32 = vpack.c.bf16 %v166_v26, %v162_v22  ;;  %v211_v22 = vld [vmem:[#allocation7 + $0xd8] sm:$0xff] }
  0x84   :  { %857 = vmatprep.subr.bf16.mxu1 %v856_v52  ;;  %v280_v52 = vld [vmem:[#allocation7 + $0x300] sm:$0xff]  ;;  %v309_v36 = vld [vmem:[#allocation7 + $0x3e8] sm:$0xff]  ;;  %v215_v26 = vld [vmem:[#allocation7 + $0xf8] sm:$0xff] }
  0x85   :  { %955 = vmatpush1.bf16.msra.mxu0 %v1413_v48  ;;  %v1419_v0 = vpack.c.bf16 %v284_v53, %v280_v52  ;;  %v1434_v45 = vpack.c.bf16 %v309_v36, %v305_v35  ;;  %v138_v52 = vld [vmem:[#allocation5 + $0x290] sm:$0xff] }
  0x86   :  { %957 = vmatprep.subr.bf16.mxu0 %v1416_v51  ;;  %v142_v53 = vld [vmem:[#allocation5 + $0x2b0] sm:$0xff] }
  0x87   :  { %859 = vmatpush1.bf16.msra.mxu1 %v858_v61  ;;  %v123_v61 = vld [vmem:[#allocation5 + $0x218] sm:$0xff]  ;;  %v886_v59 = vpack.c.bf16 %v142_v53, %v138_v52  ;;  %v170_v36 = vld [vmem:[#allocation5 + $0x390] sm:$0xff] }
  0x88   :  { %861 = vmatprep.subr.bf16.mxu1 %v860_v3  ;;  %v122_v3 = vld [vmem:[#allocation5 + $0x210] sm:$0xff]  ;;  %v876_v8 = vpack.c.bf16 %v127_v62, %v123_v61  ;;  %v187_v52 = vld [vmem:[#allocation7 + $0x18] sm:$0xff] }
  0x89   :  { %959 = vmatpush1.bf16.msra.mxu0 %v1419_v0  ;;  %v878_v20 = vpack.c.bf16 %v126_v9, %v122_v3  ;;  %v146_v62 = vld [vmem:[#allocation5 + $0x2d0] sm:$0xff]  ;;  %v155_v3 = vld [vmem:[#allocation5 + $0x318] sm:$0xff] }
  0x8a   :  { %961 = vmatprep.subr.bf16.mxu0 %v1422_v5  ;;  %v154_v9 = vld [vmem:[#allocation5 + $0x310] sm:$0xff]  ;;  %v191_v53 = vld [vmem:[#allocation7 + $0x38] sm:$0xff] }
  0x8b   :  { %863 = vmatpush1.bf16.msra.mxu1 %v862_v11  ;;  %v297_v11 = vld [vmem:[#allocation7 + $0x388] sm:$0xff] }
  0x8c   :  { %865 = vmatprep.subr.bf16.mxu1 %v864_v19  ;;  %v1425_v19 = vpack.c.bf16 %v292_v7, %v288_v6  ;;  %v1428_v23 = vpack.c.bf16 %v301_v12, %v297_v11  ;;  %v159_v6 = vld [vmem:[#allocation5 + $0x338] sm:$0xff]  ;;  %v158_v11 = vld [vmem:[#allocation5 + $0x330] sm:$0xff] }
  0x8d   :  { %v163_v12 = vld [vmem:[#allocation5 + $0x358] sm:$0xff] }
  0x8e   :  { %963 = vmatpush1.bf16.msra.mxu0 %v1425_v19 }
  0x8f   :  { %867 = vmatpush1.bf16.msra.mxu1 %v866_v29  ;;  %v880_v29 = vpack.c.bf16 %v135_v18, %v131_v17  ;;  %965 = vmatprep.subr.bf16.mxu0 %v1428_v23  ;;  %v167_v17 = vld [vmem:[#allocation5 + $0x378] sm:$0xff]  ;;  %v894_v18 = vpack.c.bf16 %v158_v11, %v154_v9 }
  0x90   :  { %869 = vmatprep.subr.bf16.mxu1 %v868_v37  ;;  %v139_v37 = vld [vmem:[#allocation5 + $0x298] sm:$0xff] }
  0x91   :  { %v884_v50 = vpack.c.bf16 %v143_v40, %v139_v37  ;;  %v179_v37 = vld [vmem:[#allocation5 + $0x3d8] sm:$0xff] }
  0x92   :  { %967 = vmatpush1.bf16.msra.mxu0 %v1431_v42  ;;  %v183_v40 = vld [vmem:[#allocation5 + $0x3f8] sm:$0xff] }
  0x93   :  { %871 = vmatpush1.bf16.msra.mxu1 %v870_v41  ;;  %v308_v41 = vld [vmem:[#allocation7 + $0x3e0] sm:$0xff]  ;;  %969 = vmatprep.subr.bf16.mxu0 %v1434_v45  ;;  %v203_v9 = vld [vmem:[#allocation7 + $0x98] sm:$0xff] }
  0x94   :  { %873 = vmatprep.subr.bf16.mxu1 %v872_v55  ;;  %v147_v55 = vld [vmem:[#allocation5 + $0x2d8] sm:$0xff]  ;;  %v1437_v58 = vpack.c.bf16 %v308_v41, %v304_v46  ;;  %v904_v46 = vpack.c.bf16 %v183_v40, %v179_v37  ;;  %v178_v41 = vld [vmem:[#allocation5 + $0x3d0] sm:$0xff] }
  0x95   :  { %v888_v61 = vpack.c.bf16 %v151_v56, %v147_v55  ;;  %v1442_v56 = vpack.c.bf16 %v191_v53, %v187_v52  ;;  %v207_v11 = vld [vmem:[#allocation7 + $0xb8] sm:$0xff]  ;;  %v218_v40 = vld [vmem:[#allocation7 + $0x110] sm:$0xff] }
  0x96   :  { %971 = vmatpush1.bf16.msra.mxu0 %v1437_v58  ;;  %v226_v53 = vld [vmem:[#allocation7 + $0x150] sm:$0xff] }
  0x97   :  { %875 = vmatpush1.bf16.msra.mxu1 %v874_v1  ;;  %v150_v1 = vld [vmem:[#allocation5 + $0x2f0] sm:$0xff]  ;;  %1037 = vmatprep.subr.bf16.mxu0 %v1341_v14 }
  0x98   :  { %877 = vmatprep.subr.bf16.mxu1 %v876_v8  ;;  %v890_v7 = vpack.c.bf16 %v150_v1, %v146_v62  ;;  %v892_v8 = vpack.c.bf16 %v159_v6, %v155_v3  ;;  %v174_v14 = vld [vmem:[#allocation5 + $0x3b0] sm:$0xff]  ;;  %v195_v62 = vld [vmem:[#allocation7 + $0x58] sm:$0xff] }
  0x99   :  { %v199_v1 = vld [vmem:[#allocation7 + $0x78] sm:$0xff] }
  0x9a   :  { %v1447_v6 = vpack.c.bf16 %v199_v1, %v195_v62 }
  0x9b   :  { %879 = vmatpush1.bf16.msra.mxu1 %v878_v20  ;;  %v896_v20 = vpack.c.bf16 %v167_v17, %v163_v12  ;;  %v1454_v17 = vpack.c.bf16 %v207_v11, %v203_v9  ;;  %v243_v9 = vld [vmem:[#allocation7 + $0x1d8] sm:$0xff] }
  0x9c   :  { %881 = vmatprep.subr.bf16.mxu1 %v880_v29  ;;  %v175_v29 = vld [vmem:[#allocation5 + $0x3b8] sm:$0xff] }
  0x9d   :  { %v900_v35 = vpack.c.bf16 %v175_v29, %v171_v27  ;;  %v1460_v29 = vpack.c.bf16 %v215_v26, %v211_v22  ;;  %v247_v11 = vld [vmem:[#allocation7 + $0x1f8] sm:$0xff]  ;;  %v242_v22 = vld [vmem:[#allocation7 + $0x1d0] sm:$0xff] }
  0x9e   :  { %v246_v26 = vld [vmem:[#allocation7 + $0x1f0] sm:$0xff] }
  0x9f   :  { %883 = vmatpush1.bf16.msra.mxu1 %v882_v43  ;;  %v902_v43 = vpack.c.bf16 %v174_v14, %v170_v36  ;;  %v223_v36 = vld [vmem:[#allocation7 + $0x138] sm:$0xff] }
  0xa0   :  { %885 = vmatprep.subr.bf16.mxu1 %v884_v50  ;;  %v182_v50 = vld [vmem:[#allocation5 + $0x3f0] sm:$0xff] }
  0xa1   :  { %v906_v55 = vpack.c.bf16 %v182_v50, %v178_v41  ;;  %v231_v41 = vld [vmem:[#allocation7 + $0x178] sm:$0xff] }
  0xa3   :  { %887 = vmatpush1.bf16.msra.mxu1 %v886_v59  ;;  %v186_v59 = vld [vmem:[#allocation7 + $0x10] sm:$0xff] }
  0xa4   :  { %889 = vmatprep.subr.bf16.mxu1 %v888_v61  ;;  %v190_v61 = vld [vmem:[#allocation7 + $0x30] sm:$0xff] }
  0xa5   :  { %v1444_v3 = vpack.c.bf16 %v190_v61, %v186_v59  ;;  %v235_v59 = vld [vmem:[#allocation7 + $0x198] sm:$0xff] }
  0xa6   :  { %v239_v61 = vld [vmem:[#allocation7 + $0x1b8] sm:$0xff] }
  0xa7   :  { %891 = vmatpush1.bf16.msra.mxu1 %v890_v7  ;;  %v194_v7 = vld [vmem:[#allocation7 + $0x50] sm:$0xff]  ;;  %v1478_v1 = vpack.c.bf16 %v239_v61, %v235_v59 }
  0xa8   :  { %893 = vmatprep.subr.bf16.mxu1 %v892_v8  ;;  %v198_v8 = vld [vmem:[#allocation7 + $0x70] sm:$0xff] }
  0xa9   :  { %v1451_v12 = vpack.c.bf16 %v198_v8, %v194_v7  ;;  %v234_v7 = vld [vmem:[#allocation7 + $0x190] sm:$0xff] }
  0xaa   :  { %v238_v8 = vld [vmem:[#allocation7 + $0x1b0] sm:$0xff] }
  0xab   :  { %895 = vmatpush1.bf16.msra.mxu1 %v894_v18  ;;  %v202_v18 = vld [vmem:[#allocation7 + $0x90] sm:$0xff] }
  0xac   :  { %897 = vmatprep.subr.bf16.mxu1 %v896_v20  ;;  %v206_v20 = vld [vmem:[#allocation7 + $0xb0] sm:$0xff] }
  0xad   :  { %v1457_v27 = vpack.c.bf16 %v206_v20, %v202_v18  ;;  %v1481_v18 = vpack.c.bf16 %v238_v8, %v234_v7  ;;  %v1484_v20 = vpack.c.bf16 %v247_v11, %v243_v9  ;;  %v258_v59 = vld [vmem:[#allocation7 + $0x250] sm:$0xff]  ;;  %v267_v7 = vld [vmem:[#allocation7 + $0x298] sm:$0xff] }
  0xae   :  { %v262_v61 = vld [vmem:[#allocation7 + $0x270] sm:$0xff]  ;;  %v271_v8 = vld [vmem:[#allocation7 + $0x2b8] sm:$0xff] }
  0xaf   :  { %899 = vmatpush1.bf16.msra.mxu1 %v898_v32  ;;  %v214_v32 = vld [vmem:[#allocation7 + $0xf0] sm:$0xff]  ;;  %v1499_v9 = vpack.c.bf16 %v262_v61, %v258_v59  ;;  %v1502_v11 = vpack.c.bf16 %v271_v8, %v267_v7  ;;  %v283_v59 = vld [vmem:[#allocation7 + $0x318] sm:$0xff] }
  0xb0   :  { %901 = vmatprep.subr.bf16.mxu1 %v900_v35  ;;  %v219_v35 = vld [vmem:[#allocation7 + $0x118] sm:$0xff] }
  0xb1   :  { %v1466_v37 = vpack.c.bf16 %v223_v36, %v219_v35  ;;  %v1487_v35 = vpack.c.bf16 %v246_v26, %v242_v22  ;;  %1627 = vst [vmem:[#allocation13_spill] sm:$0xff] %v1499_v9  ;;  %1628 = vst [vmem:[#allocation14_spill] sm:$0xff] %v1502_v11  ;;  %v266_v22 = vld [vmem:[#allocation7 + $0x290] sm:$0xff]  ;;  %v287_v61 = vld [vmem:[#allocation7 + $0x338] sm:$0xff] }
  0xb2   :  { %v270_v26 = vld [vmem:[#allocation7 + $0x2b0] sm:$0xff]  ;;  %v1514_v8 = vpack.c.bf16 %v287_v61, %v283_v59 }
  0xb3   :  { %903 = vmatpush1.bf16.msra.mxu1 %v902_v43  ;;  %v222_v43 = vld [vmem:[#allocation7 + $0x130] sm:$0xff] }
  0xb4   :  { %905 = vmatprep.subr.bf16.mxu1 %v904_v46  ;;  %v227_v46 = vld [vmem:[#allocation7 + $0x158] sm:$0xff]  ;;  %v1469_v50 = vpack.c.bf16 %v222_v43, %v218_v40  ;;  %v250_v40 = vld [vmem:[#allocation7 + $0x210] sm:$0xff]  ;;  %1632 = vst [vmem:[#allocation18_spill] sm:$0xff] %v1514_v8 }
  0xb5   :  { %v1472_v52 = vpack.c.bf16 %v231_v41, %v227_v46  ;;  %v254_v43 = vld [vmem:[#allocation7 + $0x230] sm:$0xff]  ;;  %v259_v46 = vld [vmem:[#allocation7 + $0x258] sm:$0xff] }
  0xb6   :  { %v263_v41 = vld [vmem:[#allocation7 + $0x278] sm:$0xff] }
  0xb7   :  { %907 = vmatpush1.bf16.msra.mxu1 %v906_v55  ;;  %v230_v55 = vld [vmem:[#allocation7 + $0x170] sm:$0xff] }
  0xb8   :  { %973 = vmatprep.subr.bf16.mxu1 %v1442_v56  ;;  %v1475_v62 = vpack.c.bf16 %v230_v55, %v226_v53  ;;  %v1493_v53 = vpack.c.bf16 %v254_v43, %v250_v40  ;;  %v1496_v55 = vpack.c.bf16 %v263_v41, %v259_v46  ;;  %v1505_v40 = vpack.c.bf16 %v270_v26, %v266_v22  ;;  %v274_v46 = vld [vmem:[#allocation7 + $0x2d0] sm:$0xff]  ;;  %v291_v22 = vld [vmem:[#allocation7 + $0x358] sm:$0xff] }
  0xb9   :  { %v278_v41 = vld [vmem:[#allocation7 + $0x2f0] sm:$0xff]  ;;  %v295_v26 = vld [vmem:[#allocation7 + $0x378] sm:$0xff] }
  0xba   :  { %448 = vmatmul.mubr.f32.vlgmr.msra.gmra.mrb[2].mxu1 %v1372_v15  ;;  %v210_v15 = vld [vmem:[#allocation7 + $0xd0] sm:$0xff]  ;;  %1626 = vst [vmem:[#allocation12_spill] sm:$0xff] %v1496_v55  ;;  %1629 = vst [vmem:[#allocation15_spill] sm:$0xff] %v1505_v40  ;;  %v1511_v7 = vpack.c.bf16 %v278_v41, %v274_v46  ;;  %v299_v46 = vld [vmem:[#allocation7 + $0x398] sm:$0xff] }
  0xbb   :  { %975 = vmatpush1.bf16.msra.mxu1 %v1444_v3  ;;  %v1463_v14 = vpack.c.bf16 %v214_v32, %v210_v15  ;;  %v251_v15 = vld [vmem:[#allocation7 + $0x218] sm:$0xff] }
  0xbc   :  { %977 = vmatprep.subr.bf16.mxu1 %v1447_v6  ;;  %v255_v32 = vld [vmem:[#allocation7 + $0x238] sm:$0xff]  ;;  %1631 = vst [vmem:[#allocation17_spill] sm:$0xff] %v1511_v7 }
  0xbd   :  { %v1490_v36 = vpack.c.bf16 %v255_v32, %v251_v15  ;;  %v275_v15 = vld [vmem:[#allocation7 + $0x2d8] sm:$0xff] }
  0xbe   :  { %v279_v32 = vld [vmem:[#allocation7 + $0x2f8] sm:$0xff] }
  0xbf   :  { %979 = vmatpush1.bf16.msra.mxu1 %v1451_v12  ;;  %v1508_v43 = vpack.c.bf16 %v279_v32, %v275_v15  ;;  %v1520_v32 = vpack.c.bf16 %v295_v26, %v291_v22  ;;  %v303_v41 = vld [vmem:[#allocation7 + $0x3b8] sm:$0xff] }
  0xc0   :  { %981 = vmatprep.subr.bf16.mxu1 %v1454_v17  ;;  %v1526_v61 = vpack.c.bf16 %v303_v41, %v299_v46 }
  0xc1   :  { %1630 = vst [vmem:[#allocation16_spill] sm:$0xff] %v1508_v43 }
  0xc3   :  { %983 = vmatpush1.bf16.msra.mxu1 %v1457_v27 }
  0xc4   :  { %985 = vmatprep.subr.bf16.mxu1 %v1460_v29 }
  0xc7   :  { %987 = vmatpush1.bf16.msra.mxu1 %v1463_v14 }
  0xc8   :  { %989 = vmatprep.subr.bf16.mxu1 %v1466_v37 }
  0xcb   :  { %991 = vmatpush1.bf16.msra.mxu1 %v1469_v50 }
  0xcc   :  { %993 = vmatprep.subr.bf16.mxu1 %v1472_v52 }
  0xcf   :  { %995 = vmatpush1.bf16.msra.mxu1 %v1475_v62 }
  0xd0   :  { %997 = vmatprep.subr.bf16.mxu1 %v1478_v1 }
  0xd3   :  { %999 = vmatpush1.bf16.msra.mxu1 %v1481_v18 }
  0xd4   :  { %1001 = vmatprep.subr.bf16.mxu1 %v1484_v20 }
  0xd7   :  { %1003 = vmatpush1.bf16.msra.mxu1 %v1487_v35 }
  0xd8   :  { %1005 = vmatprep.subr.bf16.mxu1 %v1490_v36 }
  0xdb   :  { %1007 = vmatpush1.bf16.msra.mxu1 %v1493_v53 }
  0xdc   :  { %1009 = vmatprep.subr.bf16.mxu1 %v1496_v55  ;;  %v282_v55 = vld [vmem:[#allocation7 + $0x310] sm:$0xff] }
  0xdf   :  { %1011 = vmatpush1.bf16.msra.mxu1 %v1499_v9  ;;  %v286_v9 = vld [vmem:[#allocation7 + $0x330] sm:$0xff] }
  0xe0   :  { %1013 = vmatprep.subr.bf16.mxu1 %v1502_v11  ;;  %v1517_v15 = vpack.c.bf16 %v286_v9, %v282_v55  ;;  %v290_v11 = vld [vmem:[#allocation7 + $0x350] sm:$0xff]  ;;  %v307_v55 = vld [vmem:[#allocation7 + $0x3d8] sm:$0xff] }
  0xe1   :  { %v311_v9 = vld [vmem:[#allocation7 + $0x3f8] sm:$0xff] }
  0xe2   :  { %1633 = vst [vmem:[#allocation19_spill] sm:$0xff] %v1517_v15  ;;  %v1532_v26 = vpack.c.bf16 %v311_v9, %v307_v55 }
  0xe3   :  { %1015 = vmatpush1.bf16.msra.mxu1 %v1505_v40  ;;  %v294_v40 = vld [vmem:[#allocation7 + $0x370] sm:$0xff] }
  0xe4   :  { %1017 = vmatprep.subr.bf16.mxu1 %v1508_v43  ;;  %v1523_v59 = vpack.c.bf16 %v294_v40, %v290_v11  ;;  %v298_v43 = vld [vmem:[#allocation7 + $0x390] sm:$0xff] }
  0xe7   :  { %1019 = vmatpush1.bf16.msra.mxu1 %v1511_v7  ;;  %v302_v7 = vld [vmem:[#allocation7 + $0x3b0] sm:$0xff] }
  0xe8   :  { %1021 = vmatprep.subr.bf16.mxu1 %v1514_v8  ;;  %v1529_v22 = vpack.c.bf16 %v302_v7, %v298_v43  ;;  %v306_v8 = vld [vmem:[#allocation7 + $0x3d0] sm:$0xff] }
  0xeb   :  { %1023 = vmatpush1.bf16.msra.mxu1 %v1517_v15  ;;  %v310_v15 = vld [vmem:[#allocation7 + $0x3f0] sm:$0xff] }
  0xec   :  { %1025 = vmatprep.subr.bf16.mxu1 %v1520_v32  ;;  %v1535_v11 = vpack.c.bf16 %v310_v15, %v306_v8 }
  0xef   :  { %1027 = vmatpush1.bf16.msra.mxu1 %v1523_v59 }
  0xf0   :  { %1029 = vmatprep.subr.bf16.mxu1 %v1526_v61 }
  0xf3   :  { %1031 = vmatpush1.bf16.msra.mxu1 %v1529_v22 }
  0xf4   :  { %1033 = vmatprep.subr.bf16.mxu1 %v1532_v26 }
  0xf7   :  { %1035 = vmatpush1.bf16.msra.mxu1 %v1535_v11 }
 0x14d   :  { %v378_v40 = vpop.f32.mrb[0].mxu1 }
 0x14e   :  { %v380_v46 = vpop.f32.mrb[1].mxu1 }
 0x14f   :  { %518 = vmatprep.mubr.f32.mxu0 %v380_v46  ;;  %589 = vmatprep.mubr.f32.mxu1 %v380_v46 }
 0x150   :  { %519 = vmatmul.mubr.f32.vlgmr.msra.gmra.mrb[0].mxu0 %v378_v40  ;;  %590 = vmatmul.mubr.f32.vlgmr.msra.gmra.mrb[4].mxu1 %v378_v40 }
 0x151   :  { %1039 = vmatpush1.bf16.msra.mxu0 %v1343_v21 }
 0x152   :  { %1041 = vmatprep.subr.bf16.mxu0 %v1347_v25 }
 0x155   :  { %1043 = vmatpush1.bf16.msra.mxu0 %v1349_v30  ;;  %v1634_v30 = vld [vmem:[#allocation12_spill] sm:$0xff] }
 0x156   :  { %1045 = vmatprep.subr.bf16.mxu0 %v1352_v38  ;;  %v1635_v38 = vld [vmem:[#allocation13_spill] sm:$0xff] }
 0x159   :  { %1047 = vmatpush1.bf16.msra.mxu0 %v1355_v39  ;;  %v1636_v39 = vld [vmem:[#allocation14_spill] sm:$0xff] }
 0x15a   :  { %1049 = vmatprep.subr.bf16.mxu0 %v1358_v44  ;;  %v1637_v44 = vld [vmem:[#allocation15_spill] sm:$0xff] }
 0x15d   :  { %1051 = vmatpush1.bf16.msra.mxu0 %v1361_v54  ;;  %v1638_v54 = vld [vmem:[#allocation16_spill] sm:$0xff] }
 0x15e   :  { %1053 = vmatprep.subr.bf16.mxu0 %v1364_v57  ;;  %v1639_v57 = vld [vmem:[#allocation17_spill] sm:$0xff] }
 0x161   :  { %1055 = vmatpush1.bf16.msra.mxu0 %v1367_v2  ;;  %v1640_v2 = vld [vmem:[#allocation18_spill] sm:$0xff] }
 0x162   :  { %1057 = vmatprep.subr.bf16.mxu0 %v1370_v4  ;;  %v1641_v4 = vld [vmem:[#allocation19_spill] sm:$0xff] }
 0x165   :  { %1059 = vmatpush1.bf16.msra.mxu0 %v1375_v16 }
 0x166   :  { %1061 = vmatprep.subr.bf16.mxu0 %v1378_v24 }
 0x169   :  { %1063 = vmatpush1.bf16.msra.mxu0 %v1382_v31 }
 0x16a   :  { %1065 = vmatprep.subr.bf16.mxu0 %v1385_v34 }
 0x16d   :  { %1067 = vmatpush1.bf16.msra.mxu0 %v1389_v47 }
 0x16e   :  { %1069 = vmatprep.subr.bf16.mxu0 %v1392_v49 }
 0x171   :  { %1071 = vmatpush1.bf16.msra.mxu0 %v1395_v60 }
 0x172   :  { %1073 = vmatprep.subr.bf16.mxu0 %v1398_v63 }
 0x175   :  { %1075 = vmatpush1.bf16.msra.mxu0 %v1401_v10 }
 0x176   :  { %1077 = vmatprep.subr.bf16.mxu0 %v1404_v13 }
 0x179   :  { %1079 = vmatpush1.bf16.msra.mxu0 %v1407_v28 }
 0x17a   :  { %1081 = vmatprep.subr.bf16.mxu0 %v1410_v33 }
 0x17d   :  { %1083 = vmatpush1.bf16.msra.mxu0 %v1413_v48 }
 0x17e   :  { %1085 = vmatprep.subr.bf16.mxu0 %v1416_v51 }
 0x181   :  { %1087 = vmatpush1.bf16.msra.mxu0 %v1419_v0 }
 0x182   :  { %1089 = vmatprep.subr.bf16.mxu0 %v1422_v5 }
 0x185   :  { %1091 = vmatpush1.bf16.msra.mxu0 %v1425_v19 }
 0x186   :  { %1093 = vmatprep.subr.bf16.mxu0 %v1428_v23 }
 0x189   :  { %1095 = vmatpush1.bf16.msra.mxu0 %v1431_v42 }
 0x18a   :  { %1097 = vmatprep.subr.bf16.mxu0 %v1434_v45 }
 0x18d   :  { %1099 = vmatpush1.bf16.msra.mxu0 %v1437_v58  ;;  %v449_v21 = vpop.f32.mrb[2].mxu1 }
 0x18e   :  { %v451_v25 = vpop.f32.mrb[3].mxu1  ;;  %1101 = vmatprep.subr.bf16.mxu0 %v1442_v56 }
 0x18f   :  { %660 = vmatprep.mubr.f32.mxu0 %v451_v25 }
 0x190   :  { %661 = vmatmul.mubr.f32.vlgmr.msra.gmra.mrb[2].mxu0 %v449_v21 }
 0x191   :  { %1103 = vmatpush1.bf16.msra.mxu0 %v1444_v3  ;;  %731 = vmatprep.mubr.f32.mxu0 %v451_v25 }
 0x192   :  { %1105 = vmatprep.subr.bf16.mxu0 %v1447_v6 }
 0x195   :  { %1107 = vmatpush1.bf16.msra.mxu0 %v1451_v12 }
 0x196   :  { %1109 = vmatprep.subr.bf16.mxu0 %v1454_v17 }
 0x199   :  { %1111 = vmatpush1.bf16.msra.mxu0 %v1457_v27 }
 0x19a   :  { %1113 = vmatprep.subr.bf16.mxu0 %v1460_v29 }
 0x19d   :  { %1115 = vmatpush1.bf16.msra.mxu0 %v1463_v14 }
 0x19e   :  { %1117 = vmatprep.subr.bf16.mxu0 %v1466_v37 }
 0x1a1   :  { %1119 = vmatpush1.bf16.msra.mxu0 %v1469_v50 }
 0x1a2   :  { %1121 = vmatprep.subr.bf16.mxu0 %v1472_v52 }
 0x1a5   :  { %1123 = vmatpush1.bf16.msra.mxu0 %v1475_v62 }
 0x1a6   :  { %1125 = vmatprep.subr.bf16.mxu0 %v1478_v1 }
 0x1a9   :  { %1127 = vmatpush1.bf16.msra.mxu0 %v1481_v18 }
 0x1aa   :  { %1129 = vmatprep.subr.bf16.mxu0 %v1484_v20 }
 0x1ad   :  { %1131 = vmatpush1.bf16.msra.mxu0 %v1487_v35 }
 0x1ae   :  { %1133 = vmatprep.subr.bf16.mxu0 %v1490_v36 }
 0x1b1   :  { %1135 = vmatpush1.bf16.msra.mxu0 %v1493_v53 }
 0x1b2   :  { %1137 = vmatprep.subr.bf16.mxu0 %v1634_v30 }
 0x1b5   :  { %1139 = vmatpush1.bf16.msra.mxu0 %v1635_v38 }
 0x1b6   :  { %1141 = vmatprep.subr.bf16.mxu0 %v1636_v39 }
 0x1b9   :  { %1143 = vmatpush1.bf16.msra.mxu0 %v1637_v44 }
 0x1ba   :  { %1145 = vmatprep.subr.bf16.mxu0 %v1638_v54 }
 0x1bd   :  { %1147 = vmatpush1.bf16.msra.mxu0 %v1639_v57 }
 0x1be   :  { %1149 = vmatprep.subr.bf16.mxu0 %v1640_v2 }
 0x1c1   :  { %1151 = vmatpush1.bf16.msra.mxu0 %v1641_v4 }
 0x1c2   :  { %1153 = vmatprep.subr.bf16.mxu0 %v1520_v32 }
 0x1c5   :  { %1155 = vmatpush1.bf16.msra.mxu0 %v1523_v59 }
 0x1c6   :  { %1157 = vmatprep.subr.bf16.mxu0 %v1526_v61 }
 0x1c9   :  { %1159 = vmatpush1.bf16.msra.mxu0 %v1529_v22 }
 0x1ca   :  { %1161 = vmatprep.subr.bf16.mxu0 %v1532_v26 }
 0x1cd   :  { %1163 = vmatpush1.bf16.msra.mxu0 %v1535_v11 }
 0x1d0   :  { %732 = vmatmul.mubr.f32.vlgmr.msra.gmra.mrb[0].mxu0 %v449_v21 }
 0x223   :  { %v591_v16 = vpop.f32.mrb[4].mxu1 }
 0x224   :  { %v593_v24 = vpop.f32.mrb[5].mxu1 }
 0x263   :  { %v662_v31 = vpop.f32.mrb[2].mxu0 }
 0x264   :  { %v740_v34 = vsub.f32 %v591_v16, %v662_v31  ;;  %v664_v47 = vpop.f32.mrb[3].mxu0 }
 0x265   :  { %v741_v49 = vsub.f32 %v593_v24, %v664_v47 }
 0x266   :  { %v744_v63 = vmul.f32 %v740_v34, %v740_v34 }
 0x267   :  { %v745_v28 = vmul.f32 %v741_v49, %v741_v49 }
 0x2a3   :  { %v733_v60 = vpop.f32.mrb[0].mxu0 }
 0x2a4   :  { %v742_v10 = vmul.f32 %v733_v60, %v733_v60  ;;  %v735_v13 = vpop.f32.mrb[1].mxu0 }
 0x2a5   :  { %v743_v33 = vmul.f32 %v735_v13, %v735_v13 }
 0x2a6   :  { %v746_v48 = vadd.f32 %v744_v63, %v742_v10 }
 0x2a7   :  { %v747_v51 = vadd.f32 %v745_v28, %v743_v33 }
 0x2a8   :  { %1172 = vrsqrt.f32 %v746_v48  ;;  %vm750_vm0 = vcmp.eq.f32.partialorder %v746_v48, inf  ;;  %v753_v23 = vand.u32 2147483648, %v746_v48  ;;  %vm752_vm1 = vcmp.eq.f32.partialorder %v746_v48, 0.0 }
 0x2a9   :  { %1174 = vrsqrt.f32 %v747_v51  ;;  %vm757_vm2 = vcmp.eq.f32.partialorder %v747_v51, inf  ;;  %v760_v58 = vand.u32 2147483648, %v747_v51  ;;  %vm759_vm3 = vcmp.eq.f32.partialorder %v747_v51, 0.0 }
 0x2b2   :  { %v1173_v0 = vpop.eup %1172 }
 0x2b3   :  { %v1175_v5 = vpop.eup %1174  ;;  %v749_v19 = vmul.f32 %v1173_v0, %v746_v48 }
 0x2b4   :  { %v756_v42 = vmul.f32 %v1175_v5, %v747_v51 }
 0x2b5   :  { %v751_v45 = vsel %vm750_vm0, %v746_v48, %v749_v19 }
 0x2b6   :  { %v754_v56 = vsel %vm752_vm1, %v753_v23, %v751_v45  ;;  %v758_v3 = vsel %vm757_vm2, %v747_v51, %v756_v42 }
 0x2b7   :  { %v761_v6 = vsel %vm759_vm3, %v760_v58, %v758_v3  ;;  %762 = vst [vmem:[#allocation8] sm:$0xff] %v754_v56 }
 0x2b8   :  { %763 = vst [vmem:[#allocation8 + $0x8] sm:$0xff] %v761_v6 }
 0x2b9   :  { %1253 = shalt.err (!%p1250_p0)
}
 0x2ba   :  { %s1254_s25 = scalar_lea.hbm %s1617_s3, 256 }
 0x2bb   :  { %p1255_p1 = scmp.ne.s32.totalorder %s1617_s3, %s1254_s25  ;;  %p1258_p2 = scmp.lt.u32.totalorder %s1254_s25, %s1617_s3 }
 0x2bd   :  { %p1260_p3 = pnand %p1258_p2, %p1255_p1 }
 0x2bf   :  { %1263 = shalt.err (!%p1260_p3)
}
 0x2c0   :  { %773 = dma.vmem_to_hbm [thread:$0]  %s771_s21, 256, %s1617_s3, [#allocation4]  }
 0x2c1   :  { %1268 = dma.done.wait [#allocation4], 256  }
 0x2c2   :  { %1269 = vsyncadd [#allocation4], 4294967040 }
 0x2c3   :  { %777 = vsyncpa [#allocation3], 1 }
 0x2c4   :  { %778 = vsyncpa [#allocation6], 1 }
 0x2c5   :  { %779 = vsyncpa [#allocation4], 1 }

</bundles_post_ra>
